<compile_context>
chip_gen: v6e
topology: v6e:2x2x1
jax: 0.10.0
libtpu: 0.0.40
codegen_flags: <defaults>
</compile_context>

<pallas_src>
import functools

import jax
import jax.numpy as jnp
from jax.experimental import pallas as pl
from jax.experimental.pallas import tpu as pltpu


def _round_up(n: int, m: int) -> int:
    return (n + m - 1) // m * m


def _vmem_capacity_bytes() -> int:
    try:
        return int(pltpu.get_tpu_info().vmem_capacity_bytes)
    except Exception:
        return 64 << 20  # assume the most restrictive generation (v7x)


def prepare_patch_fc_params(w_t, b):
    """Pad Linear params to lane-aligned (multiple-of-128) shapes ONCE at init.

    w_t: (D_in, D_out) = PyTorch weight transposed; b: (D_out,).
    Returns (w_t_padded, b_padded(1, Dout_p), D_in, D_out)."""
    D_in, D_out = w_t.shape
    Din_p, Dout_p = _round_up(D_in, 128), _round_up(D_out, 128)
    if (Din_p, Dout_p) != (D_in, D_out):
        w_t = jnp.pad(w_t, ((0, Din_p - D_in), (0, Dout_p - D_out)))
    b = jnp.reshape(b, (-1,))
    if Dout_p != D_out:
        b = jnp.pad(b, ((0, Dout_p - D_out),))
    return w_t, b.reshape(1, Dout_p), D_in, D_out


def _patch_embed_kernel(x_ref, w_ref, b_ref, o_ref, *, normalize: bool):
    x = x_ref[...]
    # Linear on native-dtype operands (MXU fast path), f32 accumulation.
    y = jnp.dot(x, w_ref[...], preferred_element_type=jnp.float32)
    if normalize:
        # F.normalize(x, p=2, dim=-1) == x / max(||x||, 1e-12)
        #                             == x * rsqrt(max(sum(x^2), 1e-24)).
        # The projection is linear, so scaling the f32 accumulator is identical
        # and avoids materializing a normalized copy of the (TB, D_in) tile.
        xf = x.astype(jnp.float32)
        ss = jnp.sum(xf * xf, axis=-1, keepdims=True)
        inv = jax.lax.rsqrt(jnp.maximum(ss, 1e-24))  # EUP slot
        y = y * inv
    y = y + b_ref[...].astype(jnp.float32)
    o_ref[...] = y.astype(o_ref.dtype)


def patch_embedder(x, w_t, b, *, normalize_ssl: bool = False,
                   block_rows: int = 512, out_features: int | None = None):
    """x: (B, D_in); w_t: (Din_p, Dout_p) preferably pre-padded via
    prepare_patch_fc_params; b: (Dout_p,) or (1, Dout_p); -> (B, 1, D_out)."""
    B, D_in = x.shape
    if out_features is None:
        out_features = int(w_t.shape[1])  # assumes w_t is unpadded in this case

    # Fallback: pad weights per call if the caller did not pre-pad at init.
    if (w_t.shape[0] % 128) or (w_t.shape[1] % 128) or (b.size != w_t.shape[1]):
        w_t, b, _, _ = prepare_patch_fc_params(w_t, b)
    Din_p, Dout_p = int(w_t.shape[0]), int(w_t.shape[1])
    b2 = jnp.reshape(b, (1, Dout_p))
    out_dtype = x.dtype

    # ---- row tiling (adapted to B so the last tile isn't mostly zeros) ----------
    row_align = 16 if x.dtype == jnp.bfloat16 else 8
    target = max(block_rows, row_align)
    n_row_blocks = pl.cdiv(B, target)
    tb = _round_up(pl.cdiv(B, n_row_blocks), row_align)
    B_pad = n_row_blocks * tb

    # ---- pad x per call only ------------------------------------------------------
    if (B_pad, Din_p) != (B, D_in):
        x = jnp.pad(x, ((0, B_pad - B), (0, Din_p - D_in)))

    # ---- column tiling of W: keep resident if it fits, else stream N-tiles -------
    x_it = jnp.dtype(x.dtype).itemsize
    w_it = jnp.dtype(w_t.dtype).itemsize
    b_it = jnp.dtype(b2.dtype).itemsize
    o_it = jnp.dtype(out_dtype).itemsize
    vmem_budget = int(0.85 * _vmem_capacity_bytes())

    def _tile_bytes(tn, nc):
        w_bufs = 1 if nc == 1 else 2          # Buffered(1) only when W is constant
        return (2 * tb * Din_p * x_it         # double-buffered x tiles
                + 2 * tb * tn * o_it          # double-buffered out tiles
                + w_bufs * Din_p * tn * w_it  # weight tile(s)
                + w_bufs * tn * b_it)         # bias tile(s)

    units = Dout_p // 128
    num_col_blocks, tn, tile_bytes = 1, Dout_p, _tile_bytes(Dout_p, 1)
    for nc in range(1, units + 1):
        if units % nc:
            continue
        cand_tn = Dout_p // nc
        need = _tile_bytes(cand_tn, nc)
        num_col_blocks, tn, tile_bytes = nc, cand_tn, need
        if need <= vmem_budget:
            break
    # TODO(synk): very large D_in would also need a K-split; not needed for this module.

    vmem_limit = min(max(int(1.25 * tile_bytes) + (2 << 20), 16 << 20), vmem_budget)

    # ---- BlockSpecs ---------------------------------------------------------------
    x_spec = pl.BlockSpec((tb, Din_p), lambda i, j: (i, 0))
    if num_col_blocks == 1:
        # Constant index_maps: fetched once, single-buffered -> half the VMEM.
        w_spec = pl.BlockSpec((Din_p, tn), lambda i, j: (0, 0),
                              pipeline_mode=pl.Buffered(1))
        b_spec = pl.BlockSpec((1, tn), lambda i, j: (0, 0),
                              pipeline_mode=pl.Buffered(1))
    else:
        w_spec = pl.BlockSpec((Din_p, tn), lambda i, j: (0, j))
        b_spec = pl.BlockSpec((1, tn), lambda i, j: (0, j))
    o_spec = pl.BlockSpec((tb, tn), lambda i, j: (i, j))

    # ---- scheduling hint for XLA ----------------------------------------------------
    flops = 2 * B_pad * Din_p * Dout_p + (3 * B_pad * Din_p if normalize_ssl else 0)
    cost = pl.CostEstimate(
        flops=flops,
        transcendentals=B_pad * num_col_blocks if normalize_ssl else 0,
        bytes_accessed=(B_pad * Din_p * x_it + Din_p * Dout_p * w_it
                        + Dout_p * b_it + B_pad * Dout_p * o_it),
    )

    kernel = functools.partial(_patch_embed_kernel, normalize=normalize_ssl)

    out = pl.pallas_call(
        kernel,
        out_shape=jax.ShapeDtypeStruct((B_pad, Dout_p), out_dtype),
        grid_spec=pl.GridSpec(
            grid=(n_row_blocks, num_col_blocks),
            in_specs=[x_spec, w_spec, b_spec],
            out_specs=o_spec,
        ),
        compiler_params=pltpu.CompilerParams(
            # No cross-step accumulation on either axis -> both parallel
            # (megacore row/column sharding on v7x when >=2 blocks per call).
            dimension_semantics=("parallel", "parallel"),
            vmem_limit_bytes=vmem_limit,
        ),
        cost_estimate=cost,
    )(x, w_t, b2)

    # strip padding, then .unsqueeze(1) -> (B, 1, D_out)
    return out[:B, :out_features][:, None, :]


def _reference(x, w_t, b, normalize_ssl):
    if normalize_ssl:
        x = x / jnp.maximum(jnp.linalg.norm(x, axis=-1, keepdims=True), 1e-12)
    return (x @ w_t + b)[:, None, :]


if __name__ == "__main__":
    key = jax.random.PRNGKey(0)

    # ---- test 1: module defaults (nn.Linear(768 -> 512)), small batch, normalized --
    B, D_IN, D_OUT = 8, 768, 512
    kx, kw, kb, key = jax.random.split(key, 4)
    bound = 1.0 / jnp.sqrt(D_IN)
    w_t = jax.random.uniform(kw, (D_IN, D_OUT), jnp.float32, -bound, bound)
    b = jax.random.uniform(kb, (D_OUT,), jnp.float32, -bound, bound)
    x = jax.random.normal(kx, (B, D_IN), jnp.float32)   # batch = {'feat_patch': x}

    # pad params once at "init" (hoisted out of the per-call path)
    w_t_p, b_p, _, _ = prepare_patch_fc_params(w_t, b)

    out = patch_embedder(x, w_t_p, b_p, normalize_ssl=True, out_features=D_OUT)
    out = jax.block_until_ready(out)
    ref = _reference(x, w_t, b, True)
    assert out.shape == (B, 1, D_OUT), out.shape
    assert jnp.allclose(out, ref, atol=1e-4, rtol=1e-4), float(jnp.max(jnp.abs(out - ref)))

    # ---- test 2: unaligned shapes (exercise padding path), no normalization --------
    B2, D_IN2, D_OUT2 = 5, 100, 200
    kx2, kw2, kb2, key = jax.random.split(key, 4)
    bound2 = 1.0 / jnp.sqrt(D_IN2)
    w_t2 = jax.random.uniform(kw2, (D_IN2, D_OUT2), jnp.float32, -bound2, bound2)
    b2 = jax.random.uniform(kb2, (D_OUT2,), jnp.float32, -bound2, bound2)
    x2 = jax.random.normal(kx2, (B2, D_IN2), jnp.float32)

    w_t2_p, b2_p, _, _ = prepare_patch_fc_params(w_t2, b2)
    out2 = patch_embedder(x2, w_t2_p, b2_p, normalize_ssl=False, out_features=D_OUT2)
    out2 = jax.block_until_ready(out2)
    ref2 = _reference(x2, w_t2, b2, False)
    assert out2.shape == (B2, 1, D_OUT2), out2.shape
    assert jnp.allclose(out2, ref2, atol=1e-4, rtol=1e-4), float(jnp.max(jnp.abs(out2 - ref2)))

    print("KERNEL_OK")
</pallas_src>

<mosaic_0001>
module attributes {stable_mosaic.version = 11 : i64} {
  func.func @_patch_embed_kernel(%arg0: i32, %arg1: i32, %arg2: memref<8x768xf32, #tpu.memory_space<vmem>>, %arg3: memref<768x512xf32, #tpu.memory_space<vmem>>, %arg4: memref<1x512xf32, #tpu.memory_space<vmem>>, %arg5: memref<8x512xf32, #tpu.memory_space<vmem>>) attributes {dimension_semantics = [#tpu.dimension_semantics<parallel>, #tpu.dimension_semantics<parallel>], iteration_bounds = array<i64: 1, 1>, scalar_prefetch = 0 : i64, scratch_operands = 0 : i64, tpu.core_type = #tpu.core_type<tc>, window_params = [{transform_indices = @transform_0, window_bounds = array<i64: 8, 768>}, {pipeline_mode = #tpu.pipeline_mode<synchronous>, transform_indices = @transform_1, window_bounds = array<i64: 768, 512>}, {pipeline_mode = #tpu.pipeline_mode<synchronous>, transform_indices = @transform_2, window_bounds = array<i64: 1, 512>}, {transform_indices = @transform_3, window_bounds = array<i64: 8, 512>}]} {
    %c0 = arith.constant 0 : index
    %c0_0 = arith.constant 0 : index
    %0 = vector.load %arg2[%c0, %c0_0] : memref<8x768xf32, #tpu.memory_space<vmem>>, vector<8x768xf32>
    %c0_1 = arith.constant 0 : index
    %c0_2 = arith.constant 0 : index
    %1 = vector.load %arg3[%c0_1, %c0_2] : memref<768x512xf32, #tpu.memory_space<vmem>>, vector<768x512xf32>
    %cst = arith.constant dense<0.000000e+00> : vector<8x512xf32>
    %2 = tpu.matmul %0, %1, %cst {dimension_numbers = #tpu.dot_dimension_numbers<[1], [0], [0], [1], [0, 0, 1, 1], [], []>} : vector<8x768xf32>, vector<768x512xf32>, vector<8x512xf32> -> vector<8x512xf32>
    %3 = arith.mulf %0, %0 : vector<8x768xf32>
    %cst_3 = arith.constant dense<0.000000e+00> : vector<8xf32>
    %4 = vector.multi_reduction <add>, %3, %cst_3 [1] : vector<8x768xf32> to vector<8xf32>
    %5 = vector.shape_cast %4 : vector<8xf32> to vector<8x1xf32>
    %cst_4 = arith.constant 1.000000e-24 : f32
    %6 = vector.broadcast %cst_4 : f32 to vector<8x1xf32>
    %7 = arith.maximumf %5, %6 : vector<8x1xf32>
    %8 = math.rsqrt %7 : vector<8x1xf32>
    %9 = vector.broadcast %8 : vector<8x1xf32> to vector<8x512xf32>
    %10 = arith.mulf %2, %9 : vector<8x512xf32>
    %c0_5 = arith.constant 0 : index
    %c0_6 = arith.constant 0 : index
    %11 = vector.load %arg4[%c0_5, %c0_6] : memref<1x512xf32, #tpu.memory_space<vmem>>, vector<1x512xf32>
    %12 = vector.broadcast %11 : vector<1x512xf32> to vector<8x512xf32>
    %13 = arith.addf %10, %12 : vector<8x512xf32>
    %c0_7 = arith.constant 0 : index
    %c0_8 = arith.constant 0 : index
    %14 = vector.load %arg5[%c0_7, %c0_8] : memref<8x512xf32, #tpu.memory_space<vmem>>, vector<8x512xf32>
    tpu.vector_store %arg5[%c0_7, %c0_8], %13 {strides = array<i32>} : memref<8x512xf32, #tpu.memory_space<vmem>>, vector<8x512xf32>,
    return
  }
  func.func @transform_0(%arg0: i32, %arg1: i32) -> (i32, i32) {
    %c0_i32 = arith.constant 0 : i32
    %c0_i32_0 = arith.constant 0 : i32
    return %arg0, %c0_i32 : i32, i32
  }
  func.func @transform_1(%arg0: i32, %arg1: i32) -> (i32, i32) {
    %c0_i32 = arith.constant 0 : i32
    %c0_i32_0 = arith.constant 0 : i32
    %c0_i32_1 = arith.constant 0 : i32
    return %c0_i32, %c0_i32_0 : i32, i32
  }
  func.func @transform_2(%arg0: i32, %arg1: i32) -> (i32, i32) {
    %c0_i32 = arith.constant 0 : i32
    %c0_i32_0 = arith.constant 0 : i32
    %c0_i32_1 = arith.constant 0 : i32
    return %c0_i32, %c0_i32_0 : i32, i32
  }
  func.func @transform_3(%arg0: i32, %arg1: i32) -> (i32, i32) {
    %c0_i32 = arith.constant 0 : i32
    return %arg0, %arg1 : i32, i32
  }
}

</mosaic_0001>

<bundles_post_ra>
// kernel: tpu_custom_call.1
= control target key start
LH: loop header
LB: loop body
LE: loop exit
PB: predicated region body
PF: predicated region fallthrough
CT: control target
= control target key end

     0   :  { %8 = vsyncpa [#allocation3], 0  ;;  %s1101_s0 = inlined_call_operand.hbm [shape: f32[8,768], index: 0, kind: input, shape index: {}]   ;;  %s1102_s1 = inlined_call_operand.hbm [shape: f32[768,512], index: 1, kind: input, shape index: {}]   ;;  %s1103_s2 = inlined_call_operand.hbm [shape: f32[1,512], index: 2, kind: input, shape index: {}]   ;;  %s1104_s3 = inlined_call_operand.hbm [shape: f32[8,512], index: 3, kind: output, shape index: {}]  }
   0x1   :  { %9 = vsyncpa [#allocation6], 0 }
   0x2   :  { %10 = vsyncpa [#allocation4], 0  ;;  %s1029_s12 = smov [#allocation5]  }
   0x3   :  { %s26_s13 = sshll.u32 %s1029_s12, 4  ;;  %s27_s13 = int_to_ptr.vmem [resolvable:$true] %s26_s13 }
   0x4   :  { %s951_s14 = scalar_lea.vmem %s27_s13, 49152  ;;  %p956_p1 = scmp.lt.s32.totalorder %s27_s13, %s27_s13 }
   0x5   :  { %p952_p0 = scmp.ne.s32.totalorder %s27_s13, %s951_s14  ;;  %p957_p2 = scmp.lt.s32.totalorder %s951_s14, %s951_s14 }
   0x7   :  { %p958_p3 = por %p957_p2, %p956_p1 }
   0x9   :  { %p959_p4 = pnand %p958_p3, %p952_p0 }
   0xb   :  { %962 = shalt.err (!%p959_p4)
}
   0xc   :  { %s1030_s15 = smov 512   ;;  %s1031_s16 = smov 32  }
   0xd   :  { %32 = dma.hbm_to_vmem [thread:$0]  %s1102_s1, 49152, %s27_s13, [#allocation6], %s1030_s15, %s1030_s15, %s1031_s16  }
   0xe   :  { %s1032_s19 = smov [#allocation2]   ;;  %s1033_s21 = smov [#allocation7]  }
   0xf   :  { %s17_s20 = sshll.u32 %s1032_s19, 4  ;;  %s39_s22 = sshll.u32 %s1033_s21, 4  ;;  %s18_s20 = int_to_ptr.vmem [resolvable:$true] %s17_s20  ;;  %s40_s22 = int_to_ptr.vmem [resolvable:$true] %s39_s22 }
  0x10   :  { %s971_s23 = scalar_lea.vmem %s18_s20, 768  ;;  %p976_p6 = scmp.lt.s32.totalorder %s18_s20, %s18_s20 }
  0x11   :  { %p972_p5 = scmp.ne.s32.totalorder %s18_s20, %s971_s23  ;;  %p977_p7 = scmp.lt.s32.totalorder %s971_s23, %s971_s23 }
  0x13   :  { %p978_p8 = por %p977_p7, %p976_p6 }
  0x15   :  { %p979_p9 = pnand %p978_p8, %p972_p5 }
  0x17   :  { %982 = shalt.err (!%p979_p9)
}
  0x18   :  { %20 = dma.hbm_to_vmem [thread:$0]  %s1101_s0, 768, %s18_s20, [#allocation3]  }
  0x19   :  { %s991_s26 = scalar_lea.vmem %s40_s22, 64  ;;  %p996_p11 = scmp.lt.s32.totalorder %s40_s22, %s40_s22 }
  0x1a   :  { %p992_p10 = scmp.ne.s32.totalorder %s40_s22, %s991_s26  ;;  %p997_p12 = scmp.lt.s32.totalorder %s991_s26, %s991_s26 }
  0x1c   :  { %p998_p13 = por %p997_p12, %p996_p11 }
  0x1e   :  { %p999_p0 = pnand %p998_p13, %p992_p10 }
  0x20   :  { %1002 = shalt.err (!%p999_p0)
}
  0x21   :  { %42 = dma.hbm_to_vmem [thread:$0]  %s1103_s2, 64, %s40_s22, [#allocation6]  }
  0x22   :  { %1023 = dma.done.wait [#allocation3], 768  }
  0x23   :  { %1024 = vsyncadd [#allocation3], 4294966528 }
  0x24   :  { %1025 = dma.done.wait [#allocation6], 49216  }
  0x25   :  { %1026 = vsyncadd [#allocation6], 4294918080  ;;  %v119_v0 = vld [vmem:[#allocation5 + $0x1e8] sm:$0xff]  ;;  %v118_v2 = vld [vmem:[#allocation5 + $0x1e0] sm:$0xff]  ;;  %s1034_s0 = smov [#allocation8]  }
  0x26   :  { %v247_v1 = vld [vmem:[#allocation5 + $0x5e8] sm:$0xff]  ;;  %442 = vmatprep.subr.mxu0 %v119_v0  ;;  %v246_v3 = vld [vmem:[#allocation5 + $0x5e0] sm:$0xff]  ;;  %s923_s2 = sshll.u32 %s1034_s0, 4  ;;  %s924_s2 = int_to_ptr.vmem [resolvable:$true] %s923_s2 }
  0x27   :  { %513 = vmatprep.subr.mxu1 %v247_v1  ;;  %v115_v4 = vld [vmem:[#allocation5 + $0x1c8] sm:$0xff]  ;;  %443 = vmatpush1.msra.mxu0 %v118_v2  ;;  %v114_v6 = vld [vmem:[#allocation5 + $0x1c0] sm:$0xff]  ;;  %s1003_s28 = scalar_lea.vmem %s924_s2, 512  ;;  %p1008_p2 = scmp.lt.s32.totalorder %s924_s2, %s924_s2 }
  0x28   :  { %v243_v5 = vld [vmem:[#allocation5 + $0x5c8] sm:$0xff]  ;;  %514 = vmatpush1.msra.mxu1 %v246_v3  ;;  %v242_v7 = vld [vmem:[#allocation5 + $0x5c0] sm:$0xff]  ;;  %444 = vmatprep.subr.mxu0 %v115_v4  ;;  %p1004_p1 = scmp.ne.s32.totalorder %s924_s2, %s1003_s28  ;;  %p1009_p3 = scmp.lt.s32.totalorder %s1003_s28, %s1003_s28 }
  0x29   :  { %v111_v8 = vld [vmem:[#allocation5 + $0x1a8] sm:$0xff]  ;;  %515 = vmatprep.subr.mxu1 %v243_v5  ;;  %v110_v10 = vld [vmem:[#allocation5 + $0x1a0] sm:$0xff]  ;;  %445 = vmatpush1.msra.mxu0 %v114_v6 }
  0x2a   :  { %v239_v9 = vld [vmem:[#allocation5 + $0x5a8] sm:$0xff]  ;;  %v238_v11 = vld [vmem:[#allocation5 + $0x5a0] sm:$0xff]  ;;  %516 = vmatpush1.msra.mxu1 %v242_v7  ;;  %446 = vmatprep.subr.mxu0 %v111_v8  ;;  %p1010_p4 = por %p1009_p3, %p1008_p2 }
  0x2b   :  { %v107_v12 = vld [vmem:[#allocation5 + $0x188] sm:$0xff]  ;;  %517 = vmatprep.subr.mxu1 %v239_v9  ;;  %v106_v14 = vld [vmem:[#allocation5 + $0x180] sm:$0xff]  ;;  %447 = vmatpush1.msra.mxu0 %v110_v10 }
  0x2c   :  { %v235_v13 = vld [vmem:[#allocation5 + $0x588] sm:$0xff]  ;;  %v234_v15 = vld [vmem:[#allocation5 + $0x580] sm:$0xff]  ;;  %518 = vmatpush1.msra.mxu1 %v238_v11  ;;  %448 = vmatprep.subr.mxu0 %v107_v12  ;;  %p1011_p5 = pnand %p1010_p4, %p1004_p1 }
  0x2d   :  { %v103_v16 = vld [vmem:[#allocation5 + $0x168] sm:$0xff]  ;;  %519 = vmatprep.subr.mxu1 %v235_v13  ;;  %v102_v18 = vld [vmem:[#allocation5 + $0x160] sm:$0xff]  ;;  %449 = vmatpush1.msra.mxu0 %v106_v14 }
  0x2e   :  { %v231_v17 = vld [vmem:[#allocation5 + $0x568] sm:$0xff]  ;;  %v230_v19 = vld [vmem:[#allocation5 + $0x560] sm:$0xff]  ;;  %520 = vmatpush1.msra.mxu1 %v234_v15  ;;  %450 = vmatprep.subr.mxu0 %v103_v16 }
  0x2f   :  { %v99_v20 = vld [vmem:[#allocation5 + $0x148] sm:$0xff]  ;;  %521 = vmatprep.subr.mxu1 %v231_v17  ;;  %v98_v22 = vld [vmem:[#allocation5 + $0x140] sm:$0xff]  ;;  %451 = vmatpush1.msra.mxu0 %v102_v18 }
  0x30   :  { %v227_v21 = vld [vmem:[#allocation5 + $0x548] sm:$0xff]  ;;  %v226_v23 = vld [vmem:[#allocation5 + $0x540] sm:$0xff]  ;;  %522 = vmatpush1.msra.mxu1 %v230_v19  ;;  %452 = vmatprep.subr.mxu0 %v99_v20 }
  0x31   :  { %v95_v24 = vld [vmem:[#allocation5 + $0x128] sm:$0xff]  ;;  %523 = vmatprep.subr.mxu1 %v227_v21  ;;  %v94_v26 = vld [vmem:[#allocation5 + $0x120] sm:$0xff]  ;;  %453 = vmatpush1.msra.mxu0 %v98_v22 }
  0x32   :  { %v223_v25 = vld [vmem:[#allocation5 + $0x528] sm:$0xff]  ;;  %v222_v27 = vld [vmem:[#allocation5 + $0x520] sm:$0xff]  ;;  %524 = vmatpush1.msra.mxu1 %v226_v23  ;;  %454 = vmatprep.subr.mxu0 %v95_v24 }
  0x33   :  { %v91_v28 = vld [vmem:[#allocation5 + $0x108] sm:$0xff]  ;;  %525 = vmatprep.subr.mxu1 %v223_v25  ;;  %v90_v30 = vld [vmem:[#allocation5 + $0x100] sm:$0xff]  ;;  %455 = vmatpush1.msra.mxu0 %v94_v26 }
  0x34   :  { %v219_v29 = vld [vmem:[#allocation5 + $0x508] sm:$0xff]  ;;  %v218_v31 = vld [vmem:[#allocation5 + $0x500] sm:$0xff]  ;;  %526 = vmatpush1.msra.mxu1 %v222_v27  ;;  %456 = vmatprep.subr.mxu0 %v91_v28 }
  0x35   :  { %v87_v32 = vld [vmem:[#allocation5 + $0xe8] sm:$0xff]  ;;  %527 = vmatprep.subr.mxu1 %v219_v29  ;;  %v86_v34 = vld [vmem:[#allocation5 + $0xe0] sm:$0xff]  ;;  %457 = vmatpush1.msra.mxu0 %v90_v30 }
  0x36   :  { %v215_v33 = vld [vmem:[#allocation5 + $0x4e8] sm:$0xff]  ;;  %v214_v35 = vld [vmem:[#allocation5 + $0x4e0] sm:$0xff]  ;;  %528 = vmatpush1.msra.mxu1 %v218_v31  ;;  %458 = vmatprep.subr.mxu0 %v87_v32 }
  0x37   :  { %v83_v36 = vld [vmem:[#allocation5 + $0xc8] sm:$0xff]  ;;  %529 = vmatprep.subr.mxu1 %v215_v33  ;;  %v82_v38 = vld [vmem:[#allocation5 + $0xc0] sm:$0xff]  ;;  %459 = vmatpush1.msra.mxu0 %v86_v34 }
  0x38   :  { %v211_v37 = vld [vmem:[#allocation5 + $0x4c8] sm:$0xff]  ;;  %v210_v39 = vld [vmem:[#allocation5 + $0x4c0] sm:$0xff]  ;;  %530 = vmatpush1.msra.mxu1 %v214_v35  ;;  %460 = vmatprep.subr.mxu0 %v83_v36 }
  0x39   :  { %v79_v40 = vld [vmem:[#allocation5 + $0xa8] sm:$0xff]  ;;  %531 = vmatprep.subr.mxu1 %v211_v37  ;;  %v78_v42 = vld [vmem:[#allocation5 + $0xa0] sm:$0xff]  ;;  %461 = vmatpush1.msra.mxu0 %v82_v38 }
  0x3a   :  { %v207_v41 = vld [vmem:[#allocation5 + $0x4a8] sm:$0xff]  ;;  %v206_v43 = vld [vmem:[#allocation5 + $0x4a0] sm:$0xff]  ;;  %532 = vmatpush1.msra.mxu1 %v210_v39  ;;  %462 = vmatprep.subr.mxu0 %v79_v40 }
  0x3b   :  { %v75_v44 = vld [vmem:[#allocation5 + $0x88] sm:$0xff]  ;;  %533 = vmatprep.subr.mxu1 %v207_v41  ;;  %v74_v46 = vld [vmem:[#allocation5 + $0x80] sm:$0xff]  ;;  %463 = vmatpush1.msra.mxu0 %v78_v42 }
  0x3c   :  { %v203_v45 = vld [vmem:[#allocation5 + $0x488] sm:$0xff]  ;;  %v202_v47 = vld [vmem:[#allocation5 + $0x480] sm:$0xff]  ;;  %534 = vmatpush1.msra.mxu1 %v206_v43  ;;  %464 = vmatprep.subr.mxu0 %v75_v44 }
  0x3d   :  { %v71_v48 = vld [vmem:[#allocation5 + $0x68] sm:$0xff]  ;;  %535 = vmatprep.subr.mxu1 %v203_v45  ;;  %v70_v50 = vld [vmem:[#allocation5 + $0x60] sm:$0xff]  ;;  %465 = vmatpush1.msra.mxu0 %v74_v46 }
  0x3e   :  { %v199_v49 = vld [vmem:[#allocation5 + $0x468] sm:$0xff]  ;;  %v198_v51 = vld [vmem:[#allocation5 + $0x460] sm:$0xff]  ;;  %536 = vmatpush1.msra.mxu1 %v202_v47  ;;  %466 = vmatprep.subr.mxu0 %v71_v48 }
  0x3f   :  { %v67_v52 = vld [vmem:[#allocation5 + $0x48] sm:$0xff]  ;;  %537 = vmatprep.subr.mxu1 %v199_v49  ;;  %v66_v54 = vld [vmem:[#allocation5 + $0x40] sm:$0xff]  ;;  %467 = vmatpush1.msra.mxu0 %v70_v50 }
  0x40   :  { %v195_v53 = vld [vmem:[#allocation5 + $0x448] sm:$0xff]  ;;  %v194_v55 = vld [vmem:[#allocation5 + $0x440] sm:$0xff]  ;;  %538 = vmatpush1.msra.mxu1 %v198_v51  ;;  %468 = vmatprep.subr.mxu0 %v67_v52 }
  0x41   :  { %v63_v56 = vld [vmem:[#allocation5 + $0x28] sm:$0xff]  ;;  %539 = vmatprep.subr.mxu1 %v195_v53  ;;  %v62_v58 = vld [vmem:[#allocation5 + $0x20] sm:$0xff]  ;;  %469 = vmatpush1.msra.mxu0 %v66_v54 }
  0x42   :  { %v191_v57 = vld [vmem:[#allocation5 + $0x428] sm:$0xff]  ;;  %v190_v59 = vld [vmem:[#allocation5 + $0x420] sm:$0xff]  ;;  %540 = vmatpush1.msra.mxu1 %v194_v55  ;;  %470 = vmatprep.subr.mxu0 %v63_v56 }
  0x43   :  { %v59_v60 = vld [vmem:[#allocation5 + $0x8] sm:$0xff]  ;;  %541 = vmatprep.subr.mxu1 %v191_v57  ;;  %v58_v62 = vld [vmem:[#allocation5] sm:$0xff]  ;;  %471 = vmatpush1.msra.mxu0 %v62_v58 }
  0x44   :  { %v187_v61 = vld [vmem:[#allocation5 + $0x408] sm:$0xff]  ;;  %v186_v63 = vld [vmem:[#allocation5 + $0x400] sm:$0xff]  ;;  %542 = vmatpush1.msra.mxu1 %v190_v59  ;;  %472 = vmatprep.subr.mxu0 %v59_v60 }
  0x45   :  { %v183_v0 = vld [vmem:[#allocation5 + $0x3e8] sm:$0xff]  ;;  %543 = vmatprep.subr.mxu1 %v187_v61  ;;  %v182_v2 = vld [vmem:[#allocation5 + $0x3e0] sm:$0xff]  ;;  %473 = vmatpush1.msra.mxu0 %v58_v62 }
  0x46   :  { %v311_v1 = vld [vmem:[#allocation5 + $0x7e8] sm:$0xff]  ;;  %v310_v3 = vld [vmem:[#allocation5 + $0x7e0] sm:$0xff]  ;;  %544 = vmatpush1.msra.mxu1 %v186_v63  ;;  %474 = vmatprep.subr.mxu0 %v183_v0  ;;  %v1064_v63 = vld [vmem:[#allocation2 + $0x8] sm:$0xff] }
  0x47   :  { %v179_v4 = vld [vmem:[#allocation5 + $0x3c8] sm:$0xff]  ;;  %545 = vmatprep.subr.mxu1 %v311_v1  ;;  %v178_v6 = vld [vmem:[#allocation5 + $0x3c0] sm:$0xff]  ;;  %475 = vmatpush2.msra.mxu0 %v182_v2  ;;  %v1068_v2 = vld [vmem:[#allocation2] sm:$0xff] }
  0x48   :  { %v307_v5 = vld [vmem:[#allocation5 + $0x7c8] sm:$0xff]  ;;  %v306_v7 = vld [vmem:[#allocation5 + $0x7c0] sm:$0xff]  ;;  %546 = vmatpush2.msra.mxu1 %v310_v3  ;;  %476 = vmatprep.subr.mxu0 %v179_v4 }
  0x49   :  { %v175_v8 = vld [vmem:[#allocation5 + $0x3a8] sm:$0xff]  ;;  %547 = vmatprep.subr.mxu1 %v307_v5  ;;  %v174_v10 = vld [vmem:[#allocation5 + $0x3a0] sm:$0xff]  ;;  %477 = vmatpush2.msra.mxu0 %v178_v6  ;;  %v121_v5 = vld [vmem:[#allocation5 + $0x1f8] sm:$0xff] }
  0x4a   :  { %v303_v9 = vld [vmem:[#allocation5 + $0x7a8] sm:$0xff]  ;;  %v302_v11 = vld [vmem:[#allocation5 + $0x7a0] sm:$0xff]  ;;  %548 = vmatpush2.msra.mxu1 %v306_v7  ;;  %478 = vmatprep.subr.mxu0 %v175_v8  ;;  %v120_v7 = vld [vmem:[#allocation5 + $0x1f0] sm:$0xff] }
  0x4b   :  { %v171_v12 = vld [vmem:[#allocation5 + $0x388] sm:$0xff]  ;;  %549 = vmatprep.subr.mxu1 %v303_v9  ;;  %v170_v14 = vld [vmem:[#allocation5 + $0x380] sm:$0xff]  ;;  %479 = vmatpush2.msra.mxu0 %v174_v10  ;;  %v117_v9 = vld [vmem:[#allocation5 + $0x1d8] sm:$0xff] }
  0x4c   :  { %v299_v13 = vld [vmem:[#allocation5 + $0x788] sm:$0xff]  ;;  %v298_v15 = vld [vmem:[#allocation5 + $0x780] sm:$0xff]  ;;  %550 = vmatpush2.msra.mxu1 %v302_v11  ;;  %480 = vmatprep.subr.mxu0 %v171_v12  ;;  %v116_v11 = vld [vmem:[#allocation5 + $0x1d0] sm:$0xff] }
  0x4d   :  { %v167_v16 = vld [vmem:[#allocation5 + $0x368] sm:$0xff]  ;;  %551 = vmatprep.subr.mxu1 %v299_v13  ;;  %v166_v18 = vld [vmem:[#allocation5 + $0x360] sm:$0xff]  ;;  %481 = vmatpush2.msra.mxu0 %v170_v14  ;;  %v113_v13 = vld [vmem:[#allocation5 + $0x1b8] sm:$0xff] }
  0x4e   :  { %v295_v17 = vld [vmem:[#allocation5 + $0x768] sm:$0xff]  ;;  %v294_v19 = vld [vmem:[#allocation5 + $0x760] sm:$0xff]  ;;  %552 = vmatpush2.msra.mxu1 %v298_v15  ;;  %482 = vmatprep.subr.mxu0 %v167_v16  ;;  %v112_v15 = vld [vmem:[#allocation5 + $0x1b0] sm:$0xff] }
  0x4f   :  { %v163_v20 = vld [vmem:[#allocation5 + $0x348] sm:$0xff]  ;;  %553 = vmatprep.subr.mxu1 %v295_v17  ;;  %v162_v22 = vld [vmem:[#allocation5 + $0x340] sm:$0xff]  ;;  %483 = vmatpush2.msra.mxu0 %v166_v18  ;;  %v109_v17 = vld [vmem:[#allocation5 + $0x198] sm:$0xff] }
  0x50   :  { %v291_v21 = vld [vmem:[#allocation5 + $0x748] sm:$0xff]  ;;  %v290_v23 = vld [vmem:[#allocation5 + $0x740] sm:$0xff]  ;;  %554 = vmatpush2.msra.mxu1 %v294_v19  ;;  %484 = vmatprep.subr.mxu0 %v163_v20  ;;  %v108_v19 = vld [vmem:[#allocation5 + $0x190] sm:$0xff] }
  0x51   :  { %v159_v24 = vld [vmem:[#allocation5 + $0x328] sm:$0xff]  ;;  %555 = vmatprep.subr.mxu1 %v291_v21  ;;  %v158_v26 = vld [vmem:[#allocation5 + $0x320] sm:$0xff]  ;;  %485 = vmatpush2.msra.mxu0 %v162_v22  ;;  %v105_v21 = vld [vmem:[#allocation5 + $0x178] sm:$0xff] }
  0x52   :  { %v287_v25 = vld [vmem:[#allocation5 + $0x728] sm:$0xff]  ;;  %v286_v27 = vld [vmem:[#allocation5 + $0x720] sm:$0xff]  ;;  %556 = vmatpush2.msra.mxu1 %v290_v23  ;;  %486 = vmatprep.subr.mxu0 %v159_v24  ;;  %v104_v23 = vld [vmem:[#allocation5 + $0x170] sm:$0xff] }
  0x53   :  { %v155_v28 = vld [vmem:[#allocation5 + $0x308] sm:$0xff]  ;;  %557 = vmatprep.subr.mxu1 %v287_v25  ;;  %v154_v30 = vld [vmem:[#allocation5 + $0x300] sm:$0xff]  ;;  %487 = vmatpush2.msra.mxu0 %v158_v26  ;;  %v101_v25 = vld [vmem:[#allocation5 + $0x158] sm:$0xff] }
  0x54   :  { %v283_v29 = vld [vmem:[#allocation5 + $0x708] sm:$0xff]  ;;  %v282_v31 = vld [vmem:[#allocation5 + $0x700] sm:$0xff]  ;;  %558 = vmatpush2.msra.mxu1 %v286_v27  ;;  %488 = vmatprep.subr.mxu0 %v155_v28  ;;  %v100_v27 = vld [vmem:[#allocation5 + $0x150] sm:$0xff] }
  0x55   :  { %v151_v32 = vld [vmem:[#allocation5 + $0x2e8] sm:$0xff]  ;;  %559 = vmatprep.subr.mxu1 %v283_v29  ;;  %v150_v34 = vld [vmem:[#allocation5 + $0x2e0] sm:$0xff]  ;;  %489 = vmatpush2.msra.mxu0 %v154_v30  ;;  %v97_v29 = vld [vmem:[#allocation5 + $0x138] sm:$0xff] }
  0x56   :  { %v279_v33 = vld [vmem:[#allocation5 + $0x6e8] sm:$0xff]  ;;  %v278_v35 = vld [vmem:[#allocation5 + $0x6e0] sm:$0xff]  ;;  %560 = vmatpush2.msra.mxu1 %v282_v31  ;;  %490 = vmatprep.subr.mxu0 %v151_v32  ;;  %v96_v31 = vld [vmem:[#allocation5 + $0x130] sm:$0xff] }
  0x57   :  { %v147_v36 = vld [vmem:[#allocation5 + $0x2c8] sm:$0xff]  ;;  %561 = vmatprep.subr.mxu1 %v279_v33  ;;  %v146_v38 = vld [vmem:[#allocation5 + $0x2c0] sm:$0xff]  ;;  %491 = vmatpush2.msra.mxu0 %v150_v34  ;;  %v93_v33 = vld [vmem:[#allocation5 + $0x118] sm:$0xff] }
  0x58   :  { %v275_v37 = vld [vmem:[#allocation5 + $0x6c8] sm:$0xff]  ;;  %v274_v39 = vld [vmem:[#allocation5 + $0x6c0] sm:$0xff]  ;;  %562 = vmatpush2.msra.mxu1 %v278_v35  ;;  %492 = vmatprep.subr.mxu0 %v147_v36  ;;  %v92_v35 = vld [vmem:[#allocation5 + $0x110] sm:$0xff] }
  0x59   :  { %v143_v40 = vld [vmem:[#allocation5 + $0x2a8] sm:$0xff]  ;;  %563 = vmatprep.subr.mxu1 %v275_v37  ;;  %v142_v42 = vld [vmem:[#allocation5 + $0x2a0] sm:$0xff]  ;;  %493 = vmatpush2.msra.mxu0 %v146_v38  ;;  %v89_v37 = vld [vmem:[#allocation5 + $0xf8] sm:$0xff] }
  0x5a   :  { %v271_v41 = vld [vmem:[#allocation5 + $0x6a8] sm:$0xff]  ;;  %v270_v43 = vld [vmem:[#allocation5 + $0x6a0] sm:$0xff]  ;;  %564 = vmatpush2.msra.mxu1 %v274_v39  ;;  %494 = vmatprep.subr.mxu0 %v143_v40  ;;  %v88_v39 = vld [vmem:[#allocation5 + $0xf0] sm:$0xff] }
  0x5b   :  { %v139_v44 = vld [vmem:[#allocation5 + $0x288] sm:$0xff]  ;;  %565 = vmatprep.subr.mxu1 %v271_v41  ;;  %v138_v46 = vld [vmem:[#allocation5 + $0x280] sm:$0xff]  ;;  %495 = vmatpush2.msra.mxu0 %v142_v42  ;;  %v85_v41 = vld [vmem:[#allocation5 + $0xd8] sm:$0xff] }
  0x5c   :  { %v267_v45 = vld [vmem:[#allocation5 + $0x688] sm:$0xff]  ;;  %v266_v47 = vld [vmem:[#allocation5 + $0x680] sm:$0xff]  ;;  %566 = vmatpush2.msra.mxu1 %v270_v43  ;;  %496 = vmatprep.subr.mxu0 %v139_v44  ;;  %v84_v43 = vld [vmem:[#allocation5 + $0xd0] sm:$0xff] }
  0x5d   :  { %v135_v48 = vld [vmem:[#allocation5 + $0x268] sm:$0xff]  ;;  %567 = vmatprep.subr.mxu1 %v267_v45  ;;  %v134_v50 = vld [vmem:[#allocation5 + $0x260] sm:$0xff]  ;;  %497 = vmatpush2.msra.mxu0 %v138_v46  ;;  %v81_v45 = vld [vmem:[#allocation5 + $0xb8] sm:$0xff] }
  0x5e   :  { %v263_v49 = vld [vmem:[#allocation5 + $0x668] sm:$0xff]  ;;  %v262_v51 = vld [vmem:[#allocation5 + $0x660] sm:$0xff]  ;;  %568 = vmatpush2.msra.mxu1 %v266_v47  ;;  %498 = vmatprep.subr.mxu0 %v135_v48  ;;  %v80_v47 = vld [vmem:[#allocation5 + $0xb0] sm:$0xff] }
  0x5f   :  { %v131_v52 = vld [vmem:[#allocation5 + $0x248] sm:$0xff]  ;;  %569 = vmatprep.subr.mxu1 %v263_v49  ;;  %v130_v54 = vld [vmem:[#allocation5 + $0x240] sm:$0xff]  ;;  %499 = vmatpush2.msra.mxu0 %v134_v50  ;;  %v77_v49 = vld [vmem:[#allocation5 + $0x98] sm:$0xff] }
  0x60   :  { %v259_v53 = vld [vmem:[#allocation5 + $0x648] sm:$0xff]  ;;  %v258_v55 = vld [vmem:[#allocation5 + $0x640] sm:$0xff]  ;;  %570 = vmatpush2.msra.mxu1 %v262_v51  ;;  %500 = vmatprep.subr.mxu0 %v131_v52  ;;  %v76_v51 = vld [vmem:[#allocation5 + $0x90] sm:$0xff] }
  0x61   :  { %v127_v56 = vld [vmem:[#allocation5 + $0x228] sm:$0xff]  ;;  %571 = vmatprep.subr.mxu1 %v259_v53  ;;  %v126_v58 = vld [vmem:[#allocation5 + $0x220] sm:$0xff]  ;;  %501 = vmatpush2.msra.mxu0 %v130_v54  ;;  %v73_v53 = vld [vmem:[#allocation5 + $0x78] sm:$0xff] }
  0x62   :  { %v255_v57 = vld [vmem:[#allocation5 + $0x628] sm:$0xff]  ;;  %v254_v59 = vld [vmem:[#allocation5 + $0x620] sm:$0xff]  ;;  %572 = vmatpush2.msra.mxu1 %v258_v55  ;;  %502 = vmatprep.subr.mxu0 %v127_v56  ;;  %v72_v55 = vld [vmem:[#allocation5 + $0x70] sm:$0xff] }
  0x63   :  { %v123_v60 = vld [vmem:[#allocation5 + $0x208] sm:$0xff]  ;;  %573 = vmatprep.subr.mxu1 %v255_v57  ;;  %v122_v62 = vld [vmem:[#allocation5 + $0x200] sm:$0xff]  ;;  %503 = vmatpush2.msra.mxu0 %v126_v58  ;;  %v69_v57 = vld [vmem:[#allocation5 + $0x58] sm:$0xff] }
  0x64   :  { %v251_v61 = vld [vmem:[#allocation5 + $0x608] sm:$0xff]  ;;  %574 = vmatpush2.msra.mxu1 %v254_v59  ;;  %v250_v0 = vld [vmem:[#allocation5 + $0x600] sm:$0xff]  ;;  %504 = vmatprep.subr.mxu0 %v123_v60  ;;  %v68_v59 = vld [vmem:[#allocation5 + $0x50] sm:$0xff] }
  0x65   :  { %v1066_v1 = vld [vmem:[#allocation2 + $0x18] sm:$0xff]  ;;  %575 = vmatprep.subr.mxu1 %v251_v61  ;;  %v1070_v3 = vld [vmem:[#allocation2 + $0x10] sm:$0xff]  ;;  %505 = vmatpush2.msra.mxu0 %v122_v62  ;;  %v65_v61 = vld [vmem:[#allocation5 + $0x38] sm:$0xff] }
  0x66   :  { %506 = vmatprep.mubr.f32.mxu0 %v1064_v63  ;;  %v375_v4 = vld [vmem:[#allocation5 + $0x9e8] sm:$0xff]  ;;  %576 = vmatpush2.msra.mxu1 %v250_v0  ;;  %v374_v6 = vld [vmem:[#allocation5 + $0x9e0] sm:$0xff]  ;;  %v64_v0 = vld [vmem:[#allocation5 + $0x30] sm:$0xff] }
  0x67   :  { %577 = vmatprep.mubr.f32.mxu1 %v1066_v1  ;;  %507 = vmatmul.mubr.f32.vlgmr.msra.gmra.mxu0 %v1068_v2  ;;  %v371_v8 = vld [vmem:[#allocation5 + $0x9c8] sm:$0xff]  ;;  %v370_v10 = vld [vmem:[#allocation5 + $0x9c0] sm:$0xff] }
  0x68   :  { %578 = vmatmul.mubr.f32.vlgmr.msra.gmra.mxu1 %v1070_v3  ;;  %584 = vmatprep.subr.mxu0 %v375_v4  ;;  %v367_v12 = vld [vmem:[#allocation5 + $0x9a8] sm:$0xff]  ;;  %v366_v14 = vld [vmem:[#allocation5 + $0x9a0] sm:$0xff] }
  0x69   :  { %655 = vmatprep.subr.mxu1 %v121_v5  ;;  %585 = vmatpush1.msra.mxu0 %v374_v6  ;;  %v363_v16 = vld [vmem:[#allocation5 + $0x988] sm:$0xff]  ;;  %v362_v18 = vld [vmem:[#allocation5 + $0x980] sm:$0xff]  ;;  %v61_v5 = vld [vmem:[#allocation5 + $0x18] sm:$0xff] }
  0x6a   :  { %656 = vmatpush1.msra.mxu1 %v120_v7  ;;  %586 = vmatprep.subr.mxu0 %v371_v8  ;;  %v359_v20 = vld [vmem:[#allocation5 + $0x968] sm:$0xff]  ;;  %v358_v22 = vld [vmem:[#allocation5 + $0x960] sm:$0xff]  ;;  %v60_v7 = vld [vmem:[#allocation5 + $0x10] sm:$0xff] }
  0x6b   :  { %657 = vmatprep.subr.mxu1 %v117_v9  ;;  %587 = vmatpush1.msra.mxu0 %v370_v10  ;;  %v355_v24 = vld [vmem:[#allocation5 + $0x948] sm:$0xff]  ;;  %v354_v26 = vld [vmem:[#allocation5 + $0x940] sm:$0xff]  ;;  %v185_v9 = vld [vmem:[#allocation5 + $0x3f8] sm:$0xff] }
  0x6c   :  { %658 = vmatpush1.msra.mxu1 %v116_v11  ;;  %588 = vmatprep.subr.mxu0 %v367_v12  ;;  %v351_v28 = vld [vmem:[#allocation5 + $0x928] sm:$0xff]  ;;  %v350_v30 = vld [vmem:[#allocation5 + $0x920] sm:$0xff]  ;;  %v184_v11 = vld [vmem:[#allocation5 + $0x3f0] sm:$0xff] }
  0x6d   :  { %659 = vmatprep.subr.mxu1 %v113_v13  ;;  %589 = vmatpush1.msra.mxu0 %v366_v14  ;;  %v347_v32 = vld [vmem:[#allocation5 + $0x908] sm:$0xff]  ;;  %v346_v34 = vld [vmem:[#allocation5 + $0x900] sm:$0xff]  ;;  %v181_v13 = vld [vmem:[#allocation5 + $0x3d8] sm:$0xff] }
  0x6e   :  { %660 = vmatpush1.msra.mxu1 %v112_v15  ;;  %590 = vmatprep.subr.mxu0 %v363_v16  ;;  %v343_v36 = vld [vmem:[#allocation5 + $0x8e8] sm:$0xff]  ;;  %v342_v38 = vld [vmem:[#allocation5 + $0x8e0] sm:$0xff]  ;;  %v180_v15 = vld [vmem:[#allocation5 + $0x3d0] sm:$0xff] }
  0x6f   :  { %661 = vmatprep.subr.mxu1 %v109_v17  ;;  %591 = vmatpush1.msra.mxu0 %v362_v18  ;;  %v339_v40 = vld [vmem:[#allocation5 + $0x8c8] sm:$0xff]  ;;  %v338_v42 = vld [vmem:[#allocation5 + $0x8c0] sm:$0xff]  ;;  %v177_v17 = vld [vmem:[#allocation5 + $0x3b8] sm:$0xff] }
  0x70   :  { %662 = vmatpush1.msra.mxu1 %v108_v19  ;;  %592 = vmatprep.subr.mxu0 %v359_v20  ;;  %v335_v44 = vld [vmem:[#allocation5 + $0x8a8] sm:$0xff]  ;;  %v334_v46 = vld [vmem:[#allocation5 + $0x8a0] sm:$0xff]  ;;  %v176_v19 = vld [vmem:[#allocation5 + $0x3b0] sm:$0xff] }
  0x71   :  { %663 = vmatprep.subr.mxu1 %v105_v21  ;;  %593 = vmatpush1.msra.mxu0 %v358_v22  ;;  %v331_v48 = vld [vmem:[#allocation5 + $0x888] sm:$0xff]  ;;  %v330_v50 = vld [vmem:[#allocation5 + $0x880] sm:$0xff]  ;;  %v173_v21 = vld [vmem:[#allocation5 + $0x398] sm:$0xff] }
  0x72   :  { %664 = vmatpush1.msra.mxu1 %v104_v23  ;;  %594 = vmatprep.subr.mxu0 %v355_v24  ;;  %v327_v52 = vld [vmem:[#allocation5 + $0x868] sm:$0xff]  ;;  %v326_v54 = vld [vmem:[#allocation5 + $0x860] sm:$0xff]  ;;  %v172_v23 = vld [vmem:[#allocation5 + $0x390] sm:$0xff] }
  0x73   :  { %665 = vmatprep.subr.mxu1 %v101_v25  ;;  %595 = vmatpush1.msra.mxu0 %v354_v26  ;;  %v323_v56 = vld [vmem:[#allocation5 + $0x848] sm:$0xff]  ;;  %v322_v58 = vld [vmem:[#allocation5 + $0x840] sm:$0xff]  ;;  %v169_v25 = vld [vmem:[#allocation5 + $0x378] sm:$0xff] }
  0x74   :  { %666 = vmatpush1.msra.mxu1 %v100_v27  ;;  %596 = vmatprep.subr.mxu0 %v351_v28  ;;  %v319_v60 = vld [vmem:[#allocation5 + $0x828] sm:$0xff]  ;;  %v318_v62 = vld [vmem:[#allocation5 + $0x820] sm:$0xff]  ;;  %v168_v27 = vld [vmem:[#allocation5 + $0x370] sm:$0xff] }
  0x75   :  { %667 = vmatprep.subr.mxu1 %v97_v29  ;;  %597 = vmatpush1.msra.mxu0 %v350_v30  ;;  %v315_v4 = vld [vmem:[#allocation5 + $0x808] sm:$0xff]  ;;  %v314_v6 = vld [vmem:[#allocation5 + $0x800] sm:$0xff]  ;;  %v165_v29 = vld [vmem:[#allocation5 + $0x358] sm:$0xff] }
  0x76   :  { %668 = vmatpush1.msra.mxu1 %v96_v31  ;;  %598 = vmatprep.subr.mxu0 %v347_v32  ;;  %v439_v8 = vld [vmem:[#allocation5 + $0xbe8] sm:$0xff]  ;;  %v438_v10 = vld [vmem:[#allocation5 + $0xbe0] sm:$0xff]  ;;  %v164_v31 = vld [vmem:[#allocation5 + $0x350] sm:$0xff] }
  0x77   :  { %669 = vmatprep.subr.mxu1 %v93_v33  ;;  %599 = vmatpush1.msra.mxu0 %v346_v34  ;;  %v435_v12 = vld [vmem:[#allocation5 + $0xbc8] sm:$0xff]  ;;  %v434_v14 = vld [vmem:[#allocation5 + $0xbc0] sm:$0xff]  ;;  %v161_v33 = vld [vmem:[#allocation5 + $0x338] sm:$0xff] }
  0x78   :  { %670 = vmatpush1.msra.mxu1 %v92_v35  ;;  %600 = vmatprep.subr.mxu0 %v343_v36  ;;  %v431_v16 = vld [vmem:[#allocation5 + $0xba8] sm:$0xff]  ;;  %v430_v18 = vld [vmem:[#allocation5 + $0xba0] sm:$0xff]  ;;  %v160_v35 = vld [vmem:[#allocation5 + $0x330] sm:$0xff] }
  0x79   :  { %671 = vmatprep.subr.mxu1 %v89_v37  ;;  %601 = vmatpush1.msra.mxu0 %v342_v38  ;;  %v427_v20 = vld [vmem:[#allocation5 + $0xb88] sm:$0xff]  ;;  %v426_v22 = vld [vmem:[#allocation5 + $0xb80] sm:$0xff]  ;;  %v157_v37 = vld [vmem:[#allocation5 + $0x318] sm:$0xff] }
  0x7a   :  { %672 = vmatpush1.msra.mxu1 %v88_v39  ;;  %602 = vmatprep.subr.mxu0 %v339_v40  ;;  %v423_v24 = vld [vmem:[#allocation5 + $0xb68] sm:$0xff]  ;;  %v422_v26 = vld [vmem:[#allocation5 + $0xb60] sm:$0xff]  ;;  %v156_v39 = vld [vmem:[#allocation5 + $0x310] sm:$0xff] }
  0x7b   :  { %673 = vmatprep.subr.mxu1 %v85_v41  ;;  %603 = vmatpush1.msra.mxu0 %v338_v42  ;;  %v419_v28 = vld [vmem:[#allocation5 + $0xb48] sm:$0xff]  ;;  %v418_v30 = vld [vmem:[#allocation5 + $0xb40] sm:$0xff]  ;;  %v153_v41 = vld [vmem:[#allocation5 + $0x2f8] sm:$0xff] }
  0x7c   :  { %674 = vmatpush1.msra.mxu1 %v84_v43  ;;  %604 = vmatprep.subr.mxu0 %v335_v44  ;;  %v415_v32 = vld [vmem:[#allocation5 + $0xb28] sm:$0xff]  ;;  %v414_v34 = vld [vmem:[#allocation5 + $0xb20] sm:$0xff]  ;;  %v152_v43 = vld [vmem:[#allocation5 + $0x2f0] sm:$0xff] }
  0x7d   :  { %675 = vmatprep.subr.mxu1 %v81_v45  ;;  %605 = vmatpush1.msra.mxu0 %v334_v46  ;;  %v411_v36 = vld [vmem:[#allocation5 + $0xb08] sm:$0xff]  ;;  %v410_v38 = vld [vmem:[#allocation5 + $0xb00] sm:$0xff]  ;;  %v149_v45 = vld [vmem:[#allocation5 + $0x2d8] sm:$0xff] }
  0x7e   :  { %676 = vmatpush1.msra.mxu1 %v80_v47  ;;  %606 = vmatprep.subr.mxu0 %v331_v48  ;;  %v407_v40 = vld [vmem:[#allocation5 + $0xae8] sm:$0xff]  ;;  %v406_v42 = vld [vmem:[#allocation5 + $0xae0] sm:$0xff]  ;;  %v148_v47 = vld [vmem:[#allocation5 + $0x2d0] sm:$0xff] }
  0x7f   :  { %677 = vmatprep.subr.mxu1 %v77_v49  ;;  %607 = vmatpush1.msra.mxu0 %v330_v50  ;;  %v403_v44 = vld [vmem:[#allocation5 + $0xac8] sm:$0xff]  ;;  %v402_v46 = vld [vmem:[#allocation5 + $0xac0] sm:$0xff]  ;;  %v145_v49 = vld [vmem:[#allocation5 + $0x2b8] sm:$0xff] }
  0x80   :  { %678 = vmatpush1.msra.mxu1 %v76_v51  ;;  %608 = vmatprep.subr.mxu0 %v327_v52  ;;  %v399_v48 = vld [vmem:[#allocation5 + $0xaa8] sm:$0xff]  ;;  %v398_v50 = vld [vmem:[#allocation5 + $0xaa0] sm:$0xff]  ;;  %v144_v51 = vld [vmem:[#allocation5 + $0x2b0] sm:$0xff] }
  0x81   :  { %679 = vmatprep.subr.mxu1 %v73_v53  ;;  %609 = vmatpush1.msra.mxu0 %v326_v54  ;;  %v395_v52 = vld [vmem:[#allocation5 + $0xa88] sm:$0xff]  ;;  %v141_v53 = vld [vmem:[#allocation5 + $0x298] sm:$0xff]  ;;  %v394_v54 = vld [vmem:[#allocation5 + $0xa80] sm:$0xff] }
  0x82   :  { %680 = vmatpush1.msra.mxu1 %v72_v55  ;;  %610 = vmatprep.subr.mxu0 %v323_v56  ;;  %v140_v55 = vld [vmem:[#allocation5 + $0x290] sm:$0xff]  ;;  %v391_v56 = vld [vmem:[#allocation5 + $0xa68] sm:$0xff] }
  0x83   :  { %681 = vmatprep.subr.mxu1 %v69_v57  ;;  %611 = vmatpush1.msra.mxu0 %v322_v58  ;;  %v137_v57 = vld [vmem:[#allocation5 + $0x278] sm:$0xff]  ;;  %v390_v58 = vld [vmem:[#allocation5 + $0xa60] sm:$0xff] }
  0x84   :  { %682 = vmatpush1.msra.mxu1 %v68_v59  ;;  %612 = vmatprep.subr.mxu0 %v319_v60  ;;  %v136_v59 = vld [vmem:[#allocation5 + $0x270] sm:$0xff]  ;;  %v387_v60 = vld [vmem:[#allocation5 + $0xa48] sm:$0xff] }
  0x85   :  { %683 = vmatprep.subr.mxu1 %v65_v61  ;;  %613 = vmatpush1.msra.mxu0 %v318_v62  ;;  %v133_v61 = vld [vmem:[#allocation5 + $0x258] sm:$0xff]  ;;  %v386_v62 = vld [vmem:[#allocation5 + $0xa40] sm:$0xff] }
  0x86   :  { %684 = vmatpush1.msra.mxu1 %v64_v0  ;;  %614 = vmatprep.subr.mxu0 %v315_v4  ;;  %v132_v0 = vld [vmem:[#allocation5 + $0x250] sm:$0xff]  ;;  %v383_v4 = vld [vmem:[#allocation5 + $0xa28] sm:$0xff] }
  0x87   :  { %685 = vmatprep.subr.mxu1 %v61_v5  ;;  %615 = vmatpush1.msra.mxu0 %v314_v6  ;;  %v129_v5 = vld [vmem:[#allocation5 + $0x238] sm:$0xff]  ;;  %v382_v6 = vld [vmem:[#allocation5 + $0xa20] sm:$0xff] }
  0x88   :  { %686 = vmatpush1.msra.mxu1 %v60_v7  ;;  %616 = vmatprep.subr.mxu0 %v439_v8  ;;  %v128_v7 = vld [vmem:[#allocation5 + $0x230] sm:$0xff]  ;;  %v379_v8 = vld [vmem:[#allocation5 + $0xa08] sm:$0xff] }
  0x89   :  { %687 = vmatprep.subr.mxu1 %v185_v9  ;;  %617 = vmatpush2.msra.mxu0 %v438_v10  ;;  %v125_v9 = vld [vmem:[#allocation5 + $0x218] sm:$0xff]  ;;  %v378_v10 = vld [vmem:[#allocation5 + $0xa00] sm:$0xff] }
  0x8a   :  { %688 = vmatpush2.msra.mxu1 %v184_v11  ;;  %618 = vmatprep.subr.mxu0 %v435_v12  ;;  %v1076_v11 = vld [vmem:[#allocation2 + $0x28] sm:$0xff]  ;;  %v124_v12 = vld [vmem:[#allocation5 + $0x210] sm:$0xff] }
  0x8b   :  { %689 = vmatprep.subr.mxu1 %v181_v13  ;;  %619 = vmatpush2.msra.mxu0 %v434_v14  ;;  %v1078_v13 = vld [vmem:[#allocation2 + $0x20] sm:$0xff]  ;;  %v249_v14 = vld [vmem:[#allocation5 + $0x5f8] sm:$0xff] }
  0x8c   :  { %690 = vmatpush2.msra.mxu1 %v180_v15  ;;  %620 = vmatprep.subr.mxu0 %v431_v16  ;;  %v377_v15 = vld [vmem:[#allocation5 + $0x9f8] sm:$0xff]  ;;  %v248_v16 = vld [vmem:[#allocation5 + $0x5f0] sm:$0xff] }
  0x8d   :  { %691 = vmatprep.subr.mxu1 %v177_v17  ;;  %621 = vmatpush2.msra.mxu0 %v430_v18  ;;  %v376_v17 = vld [vmem:[#allocation5 + $0x9f0] sm:$0xff]  ;;  %v245_v18 = vld [vmem:[#allocation5 + $0x5d8] sm:$0xff] }
  0x8e   :  { %692 = vmatpush2.msra.mxu1 %v176_v19  ;;  %622 = vmatprep.subr.mxu0 %v427_v20  ;;  %v373_v19 = vld [vmem:[#allocation5 + $0x9d8] sm:$0xff]  ;;  %v244_v20 = vld [vmem:[#allocation5 + $0x5d0] sm:$0xff] }
  0x8f   :  { %693 = vmatprep.subr.mxu1 %v173_v21  ;;  %623 = vmatpush2.msra.mxu0 %v426_v22  ;;  %v372_v21 = vld [vmem:[#allocation5 + $0x9d0] sm:$0xff]  ;;  %v241_v22 = vld [vmem:[#allocation5 + $0x5b8] sm:$0xff] }
  0x90   :  { %694 = vmatpush2.msra.mxu1 %v172_v23  ;;  %624 = vmatprep.subr.mxu0 %v423_v24  ;;  %v369_v23 = vld [vmem:[#allocation5 + $0x9b8] sm:$0xff]  ;;  %v240_v24 = vld [vmem:[#allocation5 + $0x5b0] sm:$0xff] }
  0x91   :  { %695 = vmatprep.subr.mxu1 %v169_v25  ;;  %625 = vmatpush2.msra.mxu0 %v422_v26  ;;  %v368_v25 = vld [vmem:[#allocation5 + $0x9b0] sm:$0xff]  ;;  %v237_v26 = vld [vmem:[#allocation5 + $0x598] sm:$0xff] }
  0x92   :  { %696 = vmatpush2.msra.mxu1 %v168_v27  ;;  %626 = vmatprep.subr.mxu0 %v419_v28  ;;  %v365_v27 = vld [vmem:[#allocation5 + $0x998] sm:$0xff]  ;;  %v236_v28 = vld [vmem:[#allocation5 + $0x590] sm:$0xff] }
  0x93   :  { %697 = vmatprep.subr.mxu1 %v165_v29  ;;  %627 = vmatpush2.msra.mxu0 %v418_v30  ;;  %v364_v29 = vld [vmem:[#allocation5 + $0x990] sm:$0xff]  ;;  %v233_v30 = vld [vmem:[#allocation5 + $0x578] sm:$0xff] }
  0x94   :  { %698 = vmatpush2.msra.mxu1 %v164_v31  ;;  %628 = vmatprep.subr.mxu0 %v415_v32  ;;  %v361_v31 = vld [vmem:[#allocation5 + $0x978] sm:$0xff]  ;;  %v232_v32 = vld [vmem:[#allocation5 + $0x570] sm:$0xff] }
  0x95   :  { %699 = vmatprep.subr.mxu1 %v161_v33  ;;  %629 = vmatpush2.msra.mxu0 %v414_v34  ;;  %v360_v33 = vld [vmem:[#allocation5 + $0x970] sm:$0xff]  ;;  %v229_v34 = vld [vmem:[#allocation5 + $0x558] sm:$0xff] }
  0x96   :  { %700 = vmatpush2.msra.mxu1 %v160_v35  ;;  %630 = vmatprep.subr.mxu0 %v411_v36  ;;  %v357_v35 = vld [vmem:[#allocation5 + $0x958] sm:$0xff]  ;;  %v228_v36 = vld [vmem:[#allocation5 + $0x550] sm:$0xff] }
  0x97   :  { %701 = vmatprep.subr.mxu1 %v157_v37  ;;  %631 = vmatpush2.msra.mxu0 %v410_v38  ;;  %v356_v37 = vld [vmem:[#allocation5 + $0x950] sm:$0xff]  ;;  %v225_v38 = vld [vmem:[#allocation5 + $0x538] sm:$0xff] }
  0x98   :  { %702 = vmatpush2.msra.mxu1 %v156_v39  ;;  %632 = vmatprep.subr.mxu0 %v407_v40  ;;  %v353_v39 = vld [vmem:[#allocation5 + $0x938] sm:$0xff]  ;;  %v224_v40 = vld [vmem:[#allocation5 + $0x530] sm:$0xff] }
  0x99   :  { %703 = vmatprep.subr.mxu1 %v153_v41  ;;  %633 = vmatpush2.msra.mxu0 %v406_v42  ;;  %v352_v41 = vld [vmem:[#allocation5 + $0x930] sm:$0xff]  ;;  %v221_v42 = vld [vmem:[#allocation5 + $0x518] sm:$0xff] }
  0x9a   :  { %704 = vmatpush2.msra.mxu1 %v152_v43  ;;  %634 = vmatprep.subr.mxu0 %v403_v44  ;;  %v349_v43 = vld [vmem:[#allocation5 + $0x918] sm:$0xff]  ;;  %v220_v44 = vld [vmem:[#allocation5 + $0x510] sm:$0xff] }
  0x9b   :  { %705 = vmatprep.subr.mxu1 %v149_v45  ;;  %635 = vmatpush2.msra.mxu0 %v402_v46  ;;  %v348_v45 = vld [vmem:[#allocation5 + $0x910] sm:$0xff]  ;;  %v217_v46 = vld [vmem:[#allocation5 + $0x4f8] sm:$0xff] }
  0x9c   :  { %706 = vmatpush2.msra.mxu1 %v148_v47  ;;  %636 = vmatprep.subr.mxu0 %v399_v48  ;;  %v345_v47 = vld [vmem:[#allocation5 + $0x8f8] sm:$0xff]  ;;  %v216_v48 = vld [vmem:[#allocation5 + $0x4f0] sm:$0xff] }
  0x9d   :  { %707 = vmatprep.subr.mxu1 %v145_v49  ;;  %637 = vmatpush2.msra.mxu0 %v398_v50  ;;  %v344_v49 = vld [vmem:[#allocation5 + $0x8f0] sm:$0xff]  ;;  %v213_v50 = vld [vmem:[#allocation5 + $0x4d8] sm:$0xff] }
  0x9e   :  { %708 = vmatpush2.msra.mxu1 %v144_v51  ;;  %638 = vmatprep.subr.mxu0 %v395_v52  ;;  %v341_v51 = vld [vmem:[#allocation5 + $0x8d8] sm:$0xff]  ;;  %v212_v52 = vld [vmem:[#allocation5 + $0x4d0] sm:$0xff] }
  0x9f   :  { %709 = vmatprep.subr.mxu1 %v141_v53  ;;  %639 = vmatpush2.msra.mxu0 %v394_v54  ;;  %v340_v53 = vld [vmem:[#allocation5 + $0x8d0] sm:$0xff]  ;;  %v209_v54 = vld [vmem:[#allocation5 + $0x4b8] sm:$0xff] }
  0xa0   :  { %710 = vmatpush2.msra.mxu1 %v140_v55  ;;  %640 = vmatprep.subr.mxu0 %v391_v56  ;;  %v337_v55 = vld [vmem:[#allocation5 + $0x8b8] sm:$0xff]  ;;  %v869_v56 = vmul.f32 %v1064_v63, %v1064_v63 }
  0xa1   :  { %711 = vmatprep.subr.mxu1 %v137_v57  ;;  %641 = vmatpush2.msra.mxu0 %v390_v58  ;;  %v868_v57 = vmul.f32 %v1068_v2, %v1068_v2  ;;  %v208_v58 = vld [vmem:[#allocation5 + $0x4b0] sm:$0xff] }
  0xa2   :  { %712 = vmatpush2.msra.mxu1 %v136_v59  ;;  %642 = vmatprep.subr.mxu0 %v387_v60  ;;  %v336_v59 = vld [vmem:[#allocation5 + $0x8b0] sm:$0xff]  ;;  %v205_v60 = vld [vmem:[#allocation5 + $0x498] sm:$0xff] }
  0xa3   :  { %713 = vmatprep.subr.mxu1 %v133_v61  ;;  %643 = vmatpush2.msra.mxu0 %v386_v62  ;;  %v333_v61 = vld [vmem:[#allocation5 + $0x898] sm:$0xff]  ;;  %v204_v62 = vld [vmem:[#allocation5 + $0x490] sm:$0xff] }
  0xa4   :  { %714 = vmatpush2.msra.mxu1 %v132_v0  ;;  %644 = vmatprep.subr.mxu0 %v383_v4  ;;  %v332_v0 = vld [vmem:[#allocation5 + $0x890] sm:$0xff]  ;;  %v201_v4 = vld [vmem:[#allocation5 + $0x478] sm:$0xff] }
  0xa5   :  { %715 = vmatprep.subr.mxu1 %v129_v5  ;;  %645 = vmatpush2.msra.mxu0 %v382_v6  ;;  %v329_v5 = vld [vmem:[#allocation5 + $0x878] sm:$0xff]  ;;  %v200_v6 = vld [vmem:[#allocation5 + $0x470] sm:$0xff] }
  0xa6   :  { %716 = vmatpush2.msra.mxu1 %v128_v7  ;;  %646 = vmatprep.subr.mxu0 %v379_v8  ;;  %v328_v7 = vld [vmem:[#allocation5 + $0x870] sm:$0xff]  ;;  %v197_v8 = vld [vmem:[#allocation5 + $0x458] sm:$0xff] }
  0xa7   :  { %717 = vmatprep.subr.mxu1 %v125_v9  ;;  %647 = vmatpush2.msra.mxu0 %v378_v10  ;;  %v325_v9 = vld [vmem:[#allocation5 + $0x858] sm:$0xff]  ;;  %v196_v10 = vld [vmem:[#allocation5 + $0x450] sm:$0xff] }
  0xa8   :  { %648 = vmatprep.mubr.f32.mxu0 %v1076_v11  ;;  %718 = vmatpush2.msra.mxu1 %v124_v12  ;;  %v324_v12 = vld [vmem:[#allocation5 + $0x850] sm:$0xff] }
  0xa9   :  { %649 = vmatmul.mubr.f32.vlgmr.msra.gmra.mxu0 %v1078_v13  ;;  %719 = vmatprep.mubr.f32.mxu1 %v1064_v63  ;;  %v874_v63 = vadd.f32 %v869_v56, %v868_v57  ;;  %v413_v56 = vld [vmem:[#allocation5 + $0xb18] sm:$0xff]  ;;  %v284_v57 = vld [vmem:[#allocation5 + $0x710] sm:$0xff] }
  0xaa   :  { %726 = vmatprep.subr.mxu0 %v249_v14  ;;  %797 = vmatprep.subr.mxu1 %v377_v15  ;;  %v193_v14 = vld [vmem:[#allocation5 + $0x438] sm:$0xff] }
  0xab   :  { %720 = vmatmul.mubr.f32.vlgmr.msra.gmra.mxu1 %v1068_v2  ;;  %727 = vmatpush1.msra.mxu0 %v248_v16  ;;  %v870_v2 = vmul.f32 %v1070_v3, %v1070_v3  ;;  %v321_v15 = vld [vmem:[#allocation5 + $0x838] sm:$0xff]  ;;  %v871_v16 = vmul.f32 %v1066_v1, %v1066_v1  ;;  %v192_v3 = vld [vmem:[#allocation5 + $0x430] sm:$0xff] }
  0xac   :  { %798 = vmatpush1.msra.mxu1 %v376_v17  ;;  %728 = vmatprep.subr.mxu0 %v245_v18  ;;  %v320_v17 = vld [vmem:[#allocation5 + $0x830] sm:$0xff] }
  0xad   :  { %799 = vmatprep.subr.mxu1 %v373_v19  ;;  %729 = vmatpush1.msra.mxu0 %v244_v20  ;;  %v875_v18 = vadd.f32 %v874_v63, %v870_v2  ;;  %v189_v19 = vld [vmem:[#allocation5 + $0x418] sm:$0xff]  ;;  %v312_v1 = vld [vmem:[#allocation5 + $0x7f0] sm:$0xff] }
  0xae   :  { %800 = vmatpush1.msra.mxu1 %v372_v21  ;;  %730 = vmatprep.subr.mxu0 %v241_v22  ;;  %v317_v20 = vld [vmem:[#allocation5 + $0x818] sm:$0xff]  ;;  %v188_v21 = vld [vmem:[#allocation5 + $0x410] sm:$0xff] }
  0xaf   :  { %801 = vmatprep.subr.mxu1 %v369_v23  ;;  %731 = vmatpush1.msra.mxu0 %v240_v24  ;;  %v316_v22 = vld [vmem:[#allocation5 + $0x810] sm:$0xff]  ;;  %v313_v23 = vld [vmem:[#allocation5 + $0x7f8] sm:$0xff] }
  0xb0   :  { %802 = vmatpush1.msra.mxu1 %v368_v25  ;;  %732 = vmatprep.subr.mxu0 %v237_v26  ;;  %v441_v24 = vld [vmem:[#allocation5 + $0xbf8] sm:$0xff]  ;;  %v440_v25 = vld [vmem:[#allocation5 + $0xbf0] sm:$0xff]  ;;  %v872_v26 = vmul.f32 %v1078_v13, %v1078_v13 }
  0xb1   :  { %803 = vmatprep.subr.mxu1 %v365_v27  ;;  %733 = vmatpush1.msra.mxu0 %v236_v28  ;;  %v876_v27 = vadd.f32 %v875_v18, %v871_v16  ;;  %v309_v28 = vld [vmem:[#allocation5 + $0x7d8] sm:$0xff]  ;;  %v404_v63 = vld [vmem:[#allocation5 + $0xad0] sm:$0xff] }
  0xb2   :  { %804 = vmatpush1.msra.mxu1 %v364_v29  ;;  %734 = vmatprep.subr.mxu0 %v233_v30  ;;  %v437_v29 = vld [vmem:[#allocation5 + $0xbd8] sm:$0xff]  ;;  %v308_v30 = vld [vmem:[#allocation5 + $0x7d0] sm:$0xff] }
  0xb3   :  { %805 = vmatprep.subr.mxu1 %v361_v31  ;;  %735 = vmatpush1.msra.mxu0 %v232_v32  ;;  %v436_v31 = vld [vmem:[#allocation5 + $0xbd0] sm:$0xff]  ;;  %v305_v32 = vld [vmem:[#allocation5 + $0x7b8] sm:$0xff] }
  0xb4   :  { %806 = vmatpush1.msra.mxu1 %v360_v33  ;;  %736 = vmatprep.subr.mxu0 %v229_v34  ;;  %v433_v33 = vld [vmem:[#allocation5 + $0xbb8] sm:$0xff]  ;;  %v304_v34 = vld [vmem:[#allocation5 + $0x7b0] sm:$0xff] }
  0xb5   :  { %807 = vmatprep.subr.mxu1 %v357_v35  ;;  %737 = vmatpush1.msra.mxu0 %v228_v36  ;;  %v432_v35 = vld [vmem:[#allocation5 + $0xbb0] sm:$0xff]  ;;  %v873_v36 = vmul.f32 %v1076_v11, %v1076_v11  ;;  %v273_v2 = vld [vmem:[#allocation5 + $0x6b8] sm:$0xff] }
  0xb6   :  { %808 = vmatpush1.msra.mxu1 %v356_v37  ;;  %738 = vmatprep.subr.mxu0 %v225_v38  ;;  %v877_v37 = vadd.f32 %v876_v27, %v872_v26  ;;  %v301_v38 = vld [vmem:[#allocation5 + $0x798] sm:$0xff]  ;;  %v252_v27 = vld [vmem:[#allocation5 + $0x610] sm:$0xff] }
  0xb7   :  { %809 = vmatprep.subr.mxu1 %v353_v39  ;;  %739 = vmatpush1.msra.mxu0 %v224_v40  ;;  %v429_v39 = vld [vmem:[#allocation5 + $0xb98] sm:$0xff]  ;;  %v300_v40 = vld [vmem:[#allocation5 + $0x790] sm:$0xff] }
  0xb8   :  { %810 = vmatpush1.msra.mxu1 %v352_v41  ;;  %740 = vmatprep.subr.mxu0 %v221_v42  ;;  %v428_v41 = vld [vmem:[#allocation5 + $0xb90] sm:$0xff]  ;;  %v297_v42 = vld [vmem:[#allocation5 + $0x778] sm:$0xff] }
  0xb9   :  { %811 = vmatprep.subr.mxu1 %v349_v43  ;;  %741 = vmatpush1.msra.mxu0 %v220_v44  ;;  %v425_v43 = vld [vmem:[#allocation5 + $0xb78] sm:$0xff]  ;;  %v296_v44 = vld [vmem:[#allocation5 + $0x770] sm:$0xff] }
  0xba   :  { %812 = vmatpush1.msra.mxu1 %v348_v45  ;;  %742 = vmatprep.subr.mxu0 %v217_v46  ;;  %v424_v45 = vld [vmem:[#allocation5 + $0xb70] sm:$0xff]  ;;  %v878_v46 = vadd.f32 %v877_v37, %v873_v36  ;;  %v393_v16 = vld [vmem:[#allocation5 + $0xa78] sm:$0xff] }
  0xbb   :  { %813 = vmatprep.subr.mxu1 %v345_v47  ;;  %743 = vmatpush1.msra.mxu0 %v216_v48  ;;  %v293_v47 = vld [vmem:[#allocation5 + $0x758] sm:$0xff] }
  0xbc   :  { %814 = vmatpush1.msra.mxu1 %v344_v49  ;;  %744 = vmatprep.subr.mxu0 %v213_v50  ;;  %v421_v48 = vld [vmem:[#allocation5 + $0xb58] sm:$0xff]  ;;  %v292_v49 = vld [vmem:[#allocation5 + $0x750] sm:$0xff] }
  0xbd   :  { %815 = vmatprep.subr.mxu1 %v341_v51  ;;  %745 = vmatpush1.msra.mxu0 %v212_v52  ;;  %v420_v50 = vld [vmem:[#allocation5 + $0xb50] sm:$0xff]  ;;  %v289_v51 = vld [vmem:[#allocation5 + $0x738] sm:$0xff] }
  0xbe   :  { %816 = vmatpush1.msra.mxu1 %v340_v53  ;;  %746 = vmatprep.subr.mxu0 %v209_v54  ;;  %v417_v52 = vld [vmem:[#allocation5 + $0xb38] sm:$0xff]  ;;  %v288_v53 = vld [vmem:[#allocation5 + $0x730] sm:$0xff] }
  0xbf   :  { %817 = vmatprep.subr.mxu1 %v337_v55  ;;  %747 = vmatpush1.msra.mxu0 %v208_v58  ;;  %v416_v54 = vld [vmem:[#allocation5 + $0xb30] sm:$0xff]  ;;  %v285_v55 = vld [vmem:[#allocation5 + $0x718] sm:$0xff] }
  0xc0   :  { %818 = vmatpush1.msra.mxu1 %v336_v59  ;;  %748 = vmatprep.subr.mxu0 %v205_v60  ;;  %v412_v58 = vld [vmem:[#allocation5 + $0xb10] sm:$0xff]  ;;  %v281_v59 = vld [vmem:[#allocation5 + $0x6f8] sm:$0xff] }
  0xc1   :  { %819 = vmatprep.subr.mxu1 %v333_v61  ;;  %749 = vmatpush1.msra.mxu0 %v204_v62  ;;  %v409_v60 = vld [vmem:[#allocation5 + $0xaf8] sm:$0xff]  ;;  %v280_v61 = vld [vmem:[#allocation5 + $0x6f0] sm:$0xff] }
  0xc2   :  { %820 = vmatpush1.msra.mxu1 %v332_v0  ;;  %750 = vmatprep.subr.mxu0 %v201_v4  ;;  %v408_v62 = vld [vmem:[#allocation5 + $0xaf0] sm:$0xff]  ;;  %v277_v0 = vld [vmem:[#allocation5 + $0x6d8] sm:$0xff] }
  0xc3   :  { %821 = vmatprep.subr.mxu1 %v329_v5  ;;  %751 = vmatpush1.msra.mxu0 %v200_v6  ;;  %v405_v4 = vld [vmem:[#allocation5 + $0xad8] sm:$0xff]  ;;  %v276_v5 = vld [vmem:[#allocation5 + $0x6d0] sm:$0xff] }
  0xc4   :  { %822 = vmatpush1.msra.mxu1 %v328_v7  ;;  %752 = vmatprep.subr.mxu0 %v197_v8  ;;  %v401_v6 = vld [vmem:[#allocation5 + $0xab8] sm:$0xff]  ;;  %v272_v7 = vld [vmem:[#allocation5 + $0x6b0] sm:$0xff] }
  0xc5   :  { %823 = vmatprep.subr.mxu1 %v325_v9  ;;  %753 = vmatpush1.msra.mxu0 %v196_v10  ;;  %v400_v8 = vld [vmem:[#allocation5 + $0xab0] sm:$0xff]  ;;  %v269_v9 = vld [vmem:[#allocation5 + $0x698] sm:$0xff] }
  0xc6   :  { %824 = vmatpush1.msra.mxu1 %v324_v12  ;;  %754 = vmatprep.subr.mxu0 %v193_v14  ;;  %v397_v10 = vld [vmem:[#allocation5 + $0xa98] sm:$0xff]  ;;  %v268_v12 = vld [vmem:[#allocation5 + $0x690] sm:$0xff] }
  0xc7   :  { %825 = vmatprep.subr.mxu1 %v321_v15  ;;  %755 = vmatpush1.msra.mxu0 %v192_v3  ;;  %v396_v14 = vld [vmem:[#allocation5 + $0xa90] sm:$0xff]  ;;  %v265_v15 = vld [vmem:[#allocation5 + $0x678] sm:$0xff] }
  0xc8   :  { %826 = vmatpush1.msra.mxu1 %v320_v17  ;;  %756 = vmatprep.subr.mxu0 %v189_v19  ;;  %v264_v3 = vld [vmem:[#allocation5 + $0x670] sm:$0xff]  ;;  %v261_v18 = vld [vmem:[#allocation5 + $0x658] sm:$0xff] }
  0xc9   :  { %827 = vmatprep.subr.mxu1 %v317_v20  ;;  %757 = vmatpush1.msra.mxu0 %v188_v21  ;;  %v392_v17 = vld [vmem:[#allocation5 + $0xa70] sm:$0xff]  ;;  %v389_v19 = vld [vmem:[#allocation5 + $0xa58] sm:$0xff] }
  0xca   :  { %828 = vmatpush1.msra.mxu1 %v316_v22  ;;  %758 = vmatprep.subr.mxu0 %v313_v23  ;;  %v260_v20 = vld [vmem:[#allocation5 + $0x650] sm:$0xff]  ;;  %v257_v22 = vld [vmem:[#allocation5 + $0x638] sm:$0xff] }
  0xcb   :  { %829 = vmatprep.subr.mxu1 %v441_v24  ;;  %759 = vmatpush2.msra.mxu0 %v312_v1  ;;  %v388_v21 = vld [vmem:[#allocation5 + $0xa50] sm:$0xff]  ;;  %v385_v23 = vld [vmem:[#allocation5 + $0xa38] sm:$0xff] }
  0xcc   :  { %830 = vmatpush2.msra.mxu1 %v440_v25  ;;  %760 = vmatprep.subr.mxu0 %v309_v28  ;;  %v256_v24 = vld [vmem:[#allocation5 + $0x630] sm:$0xff]  ;;  %v253_v25 = vld [vmem:[#allocation5 + $0x618] sm:$0xff] }
  0xcd   :  { %831 = vmatprep.subr.mxu1 %v437_v29  ;;  %761 = vmatpush2.msra.mxu0 %v308_v30  ;;  %v384_v1 = vld [vmem:[#allocation5 + $0xa30] sm:$0xff]  ;;  %v381_v26 = vld [vmem:[#allocation5 + $0xa18] sm:$0xff]  ;;  %v941_v29 = vld [vmem:[#allocation2 + $0x18] sm:$0xff] }
  0xce   :  { %832 = vmatpush2.msra.mxu1 %v436_v31  ;;  %762 = vmatprep.subr.mxu0 %v305_v32  ;;  %v380_v28 = vld [vmem:[#allocation5 + $0xa10] sm:$0xff]  ;;  %v942_v30 = vld [vmem:[#allocation2 + $0x10] sm:$0xff] }
  0xcf   :  { %833 = vmatprep.subr.mxu1 %v433_v33  ;;  %763 = vmatpush2.msra.mxu0 %v304_v34  ;;  %v889_v33 = vlaneseq }
  0xd0   :  { %834 = vmatpush2.msra.mxu1 %v432_v35  ;;  %764 = vmatprep.subr.mxu0 %v301_v38 }
  0xd1   :  { %835 = vmatprep.subr.mxu1 %v429_v39  ;;  %765 = vmatpush2.msra.mxu0 %v300_v40  ;;  %v890_v36 = vshrl.u32 %v889_v33, 7 }
  0xd2   :  { %836 = vmatpush2.msra.mxu1 %v428_v41  ;;  %766 = vmatprep.subr.mxu0 %v297_v42 }
  0xd3   :  { %837 = vmatprep.subr.mxu1 %v425_v43  ;;  %767 = vmatpush2.msra.mxu0 %v296_v44  ;;  %v891_v41 = vsub.s32 0, %v890_v36  ;;  %v895_v42 = vsub.s32 1, %v890_v36  ;;  %v887_v44 = vld [vmem:[#allocation7] sm:$0xf] }
  0xd4   :  { %838 = vmatpush2.msra.mxu1 %v424_v45  ;;  %879 = vadd.xlane.f32.xlu0 %v878_v46 }
  0xd5   :  { %768 = vmatprep.subr.mxu0 %v293_v47  ;;  %839 = vmatprep.subr.mxu1 %v421_v48  ;;  %v892_v47 = vrot.slane %v887_v44, %v891_v41 }
  0xd6   :  { %769 = vmatpush2.msra.mxu0 %v292_v49  ;;  %840 = vmatpush2.msra.mxu1 %v420_v50 }
  0xd7   :  { %770 = vmatprep.subr.mxu0 %v289_v51  ;;  %841 = vmatprep.subr.mxu1 %v417_v52 }
  0xd8   :  { %771 = vmatpush2.msra.mxu0 %v288_v53  ;;  %842 = vmatpush2.msra.mxu1 %v416_v54 }
  0xd9   :  { %772 = vmatprep.subr.mxu0 %v285_v55  ;;  %843 = vmatprep.subr.mxu1 %v413_v56  ;;  %v899_v55 = vsub.s32 2, %v890_v36 }
  0xda   :  { %773 = vmatpush2.msra.mxu0 %v284_v57  ;;  %844 = vmatpush2.msra.mxu1 %v412_v58 }
  0xdb   :  { %774 = vmatprep.subr.mxu0 %v281_v59  ;;  %845 = vmatprep.subr.mxu1 %v409_v60  ;;  %v903_v59 = vsub.s32 3, %v890_v36 }
  0xdc   :  { %775 = vmatpush2.msra.mxu0 %v280_v61  ;;  %846 = vmatpush2.msra.mxu1 %v408_v62  ;;  %v900_v62 = vrot.slane %v887_v44, %v899_v55 }
  0xdd   :  { %776 = vmatprep.subr.mxu0 %v277_v0  ;;  %847 = vmatprep.subr.mxu1 %v405_v4 }
  0xde   :  { %777 = vmatpush2.msra.mxu0 %v276_v5  ;;  %848 = vmatpush2.msra.mxu1 %v404_v63 }
  0xdf   :  { %778 = vmatprep.subr.mxu0 %v273_v2  ;;  %849 = vmatprep.subr.mxu1 %v401_v6  ;;  %v904_v2 = vrot.slane %v887_v44, %v903_v59 }
  0xe0   :  { %779 = vmatpush2.msra.mxu0 %v272_v7  ;;  %850 = vmatpush2.msra.mxu1 %v400_v8 }
  0xe1   :  { %780 = vmatprep.subr.mxu0 %v269_v9  ;;  %851 = vmatprep.subr.mxu1 %v397_v10 }
  0xe2   :  { %781 = vmatpush2.msra.mxu0 %v268_v12  ;;  %852 = vmatpush2.msra.mxu1 %v396_v14 }
  0xe3   :  { %782 = vmatprep.subr.mxu0 %v265_v15  ;;  %853 = vmatprep.subr.mxu1 %v393_v16 }
  0xe4   :  { %783 = vmatpush2.msra.mxu0 %v264_v3  ;;  %854 = vmatpush2.msra.mxu1 %v392_v17 }
  0xe5   :  { %784 = vmatprep.subr.mxu0 %v261_v18  ;;  %855 = vmatprep.subr.mxu1 %v389_v19 }
  0xe6   :  { %785 = vmatpush2.msra.mxu0 %v260_v20  ;;  %856 = vmatpush2.msra.mxu1 %v388_v21 }
  0xe7   :  { %786 = vmatprep.subr.mxu0 %v257_v22  ;;  %857 = vmatprep.subr.mxu1 %v385_v23 }
  0xe8   :  { %787 = vmatpush2.msra.mxu0 %v256_v24  ;;  %858 = vmatpush2.msra.mxu1 %v384_v1 }
  0xe9   :  { %788 = vmatprep.subr.mxu0 %v253_v25  ;;  %859 = vmatprep.subr.mxu1 %v381_v26 }
  0xea   :  { %789 = vmatpush2.msra.mxu0 %v252_v27  ;;  %790 = vmatprep.mubr.f32.mxu0 %v941_v29 }
  0xeb   :  { %860 = vmatpush2.msra.mxu1 %v380_v28  ;;  %861 = vmatprep.mubr.f32.mxu1 %v1076_v11 }
  0xec   :  { %791 = vmatmul.mubr.f32.vlgmr.msra.gmra.mxu0 %v942_v30  ;;  %862 = vmatmul.mubr.f32.vlgmr.msra.gmra.mxu1 %v1078_v13  ;;  %v896_v13 = vrot.slane %v887_v44, %v895_v42 }
 0x127   :  { %v508_v34 = vpop.f32.mrf.mxu0 }
 0x128   :  { %v579_v35 = vpop.f32.mrf.mxu1 }
 0x129   :  { %v510_v37 = vpop.f32.mrf.mxu0  ;;  %v580_v39 = vadd.f32 %v579_v35, %v508_v34 }
 0x12a   :  { %v581_v38 = vpop.f32.mrf.mxu1 }
 0x12b   :  { %v582_v43 = vadd.f32 %v581_v38, %v510_v37 }
 0x15d   :  { %v880_v31 = vpop.xlane.xlu0 %879 }
 0x15e   :  { %v881_v32 = vmax.f32 %v880_v31, 1e-24 }
 0x160   :  { %939 = vrsqrt.f32 %v881_v32 }
 0x169   :  { %v650_v40 = vpop.f32.mrf.mxu0 }
 0x16a   :  { %v651_v11 = vadd.f32 %v650_v40, %v580_v39 }
 0x16b   :  { %v652_v45 = vpop.f32.mrf.mxu0  ;;  %v721_v53 = vpop.f32.mrf.mxu1 }
 0x16c   :  { %v653_v46 = vadd.f32 %v652_v45, %v582_v43 }
 0x16d   :  { %v940_v48 = vpop.eup %939  ;;  %v723_v54 = vpop.f32.mrf.mxu1 }
 0x16e   :  { %v883_v49 = vmul.f32 %v940_v48, %v651_v11  ;;  %v884_v50 = vmul.f32 %v940_v48, %v653_v46 }
 0x170   :  { %v909_v51 = vadd.f32 %v892_v47, %v883_v49  ;;  %v910_v52 = vadd.f32 %v896_v13, %v884_v50 }
 0x172   :  { %913 = vst [vmem:[#allocation8] sm:$0xff] %v909_v51  ;;  %914 = vst [vmem:[#allocation8 + $0x8] sm:$0xff] %v910_v52 }
 0x1ac   :  { %v792_v56 = vpop.f32.mrf.mxu0  ;;  %v863_v58 = vpop.f32.mrf.mxu1 }
 0x1ad   :  { %v793_v57 = vadd.f32 %v792_v56, %v721_v53 }
 0x1ae   :  { %v794_v60 = vpop.f32.mrf.mxu0  ;;  %v865_v4 = vpop.f32.mrf.mxu1 }
 0x1af   :  { %v864_v61 = vadd.f32 %v863_v58, %v793_v57  ;;  %v795_v0 = vadd.f32 %v794_v60, %v723_v54 }
 0x1b1   :  { %v885_v5 = vmul.f32 %v940_v48, %v864_v61  ;;  %v866_v63 = vadd.f32 %v865_v4, %v795_v0 }
 0x1b3   :  { %v911_v6 = vadd.f32 %v900_v62, %v885_v5  ;;  %v886_v7 = vmul.f32 %v940_v48, %v866_v63 }
 0x1b5   :  { %915 = vst [vmem:[#allocation8 + $0x10] sm:$0xff] %v911_v6  ;;  %v912_v8 = vadd.f32 %v904_v2, %v886_v7 }
 0x1b7   :  { %916 = vst [vmem:[#allocation8 + $0x18] sm:$0xff] %v912_v8 }
 0x1b8   :  { %1014 = shalt.err (!%p1011_p5)
}
 0x1b9   :  { %926 = dma.vmem_to_hbm [thread:$0]  %s924_s2, 512, %s1104_s3, [#allocation4]  }
 0x1ba   :  { %1027 = dma.done.wait [#allocation4], 512  }
 0x1bb   :  { %1028 = vsyncadd [#allocation4], 4294966784 }
 0x1bc   :  { %930 = vsyncpa [#allocation3], 1 }
 0x1bd   :  { %931 = vsyncpa [#allocation6], 1 }
 0x1be   :  { %932 = vsyncpa [#allocation4], 1 }

</bundles_post_ra>
